<compile_context>
chip_gen: v5e
topology: v5e:2x2
jax: 0.10.0
libtpu: 0.0.40
codegen_flags: <defaults>
</compile_context>

<pallas_src>
import functools

import jax
import jax.numpy as jnp
import numpy as np
from jax.experimental import pallas as pl
from jax.experimental.pallas import tpu as pltpu


# ----------------------- synthetic "options" -----------------------
B = 2            # options.batch_size
SITR = 4         # options.samples_per_qa
MAX_LOC = 4      # options.max_locs  -> loc feature dim = 2*MAX_LOC = 8
Q_HID = 32       # question encoder hidden size
E_HID = 32       # entity encoder hidden size
ENC_OUT = 32     # options.encoder_out_dim
LOC_DIM = 2 * MAX_LOC                # 8
OUT_DIM = ENC_OUT + LOC_DIM          # 40 ('numeric' location module)
SEQ = 8          # encoder sequence length
N = B * SITR     # number of candidate entities (training mode)

LANE = 128                           # packed buffer lane width (lane-dense)
ROWS = 16                            # B+N=10 stacked rows, padded to 16
LW = 2 * LOC_DIM                     # merged (q||e) loc feature width = 16
LOC_OFF = Q_HID + E_HID              # loc features start at col 64 in act slab


# ----------------------------- kernel ------------------------------
def _vpu_mm(x, w, kdim):
    """x @ w as broadcast-FMAs on the VPU (keeps tiny matmuls off the MXU)."""
    acc = x[:, 0:1] * w[0:1, :]
    for k in range(1, kdim):
        acc = acc + x[:, k:k + 1] * w[k:k + 1, :]
    return acc


def _lamb_kernel(act_ref, w_ref, scores_ref, *, idx):
    relu = lambda v: jnp.maximum(v, 0.0)
    dot = functools.partial(jnp.dot, preferred_element_type=jnp.float32)

    def W(name):                              # static carve-out of packed blob
        r0, rr, cc = idx[name]
        return w_ref[r0:r0 + rr, 0:cc]

    act = act_ref[...]                                   # (16, 128), one load
    pooled = act[:, 0:LOC_OFF]                           # (16, 64) q||e pooled
    loc_in = act[:, LOC_OFF:LOC_OFF + LW]                # (16, 16) q||e latlng

    # --- question/entity out-layers merged into ONE MXU matmul -------------
    # rows 0..B-1 carry pooled_q in cols 0:32, rows B..B+N-1 carry pooled_c in
    # cols 32:64; W("w_out") = vstack(w_qout, w_eout); bias is a row matrix.
    out = dot(relu(pooled), W("w_out")) + W("b_out_rows")          # (16, 32)

    # --- loc encoders (NumLocationEncoder q & e), block-diag, on the VPU ---
    b_loc = W("b_loc")                                             # (3, 16)
    h = relu(_vpu_mm(loc_in, W("w_loc1"), LOC_DIM + 2) + b_loc[0:1, :])
    h = relu(_vpu_mm(h, W("w_loc2"), LOC_DIM + MAX_LOC) + b_loc[1:2, :])
    loc = _vpu_mm(h, W("w_loc3"), LW) + b_loc[2:3, :]              # (16, 16)

    # --- fuse layers merged into ONE MXU matmul (column-blocked weight) ----
    # concat(out, loc) is a 48-lane in-vreg concat; output cols 0:40 are the
    # question-fuse result, cols 40:80 the entity-fuse result.
    fuse_in = jnp.concatenate([out, loc], axis=-1)                 # (16, 48)
    fused = dot(fuse_in, W("w_fuse")) + W("b_fuse_rows")           # (16, 80)

    fused_q = fused[0:B, 0:OUT_DIM]                                # (B, 40)
    fused_c = fused[B:B + N, OUT_DIM:2 * OUT_DIM]                  # (N, 40)

    # --- score ('dot', training): broadcast q over samples_per_qa via a
    #     one-hot expand (VPU), one lane reduce, ONE store -------------------
    fq_rep = _vpu_mm(W("expand"), fused_q, B)                      # (N, 40)
    scores_ref[...] = jnp.sum(fq_rep * fused_c, axis=-1, keepdims=True)


# --------------------------- weight packing -------------------------
def pack_lamb_params(params):
    """Pack all layer weights/biases into one (rows, 128) f32 blob (built once)
    and return it together with a dict of static (row, rows, cols) offsets."""
    f = lambda a: np.asarray(a, dtype=np.float32)

    # out layers: vstack so stacked [q; e] rows hit the right weight block
    w_out = np.concatenate([f(params["w_qout"]), f(params["w_eout"])], axis=0)
    b_out_rows = np.zeros((ROWS, ENC_OUT), np.float32)
    b_out_rows[0:B, :] = f(params["b_qout"])
    b_out_rows[B:B + N, :] = f(params["b_eout"])

    # loc encoders: block-diagonal merge (q block cols 0:8, e block cols 8:16)
    w_loc1 = np.zeros((LW, LW), np.float32)
    w_loc1[0:LOC_DIM, 0:LOC_DIM] = f(params["wq1"])
    w_loc1[LOC_DIM:LOC_DIM + 2, LOC_DIM:LOC_DIM + MAX_LOC] = f(params["we1"])
    w_loc2 = np.zeros((LW, LW), np.float32)
    w_loc2[0:LOC_DIM, 0:LOC_DIM] = f(params["wq2"])
    w_loc2[LOC_DIM:LOC_DIM + MAX_LOC, LOC_DIM:LW] = f(params["we2"])
    w_loc3 = np.zeros((LW, LW), np.float32)
    w_loc3[0:LOC_DIM, 0:LOC_DIM] = f(params["wq3"])
    w_loc3[LOC_DIM:LW, LOC_DIM:LW] = f(params["we3"])
    b_loc = np.zeros((3, LW), np.float32)
    b_loc[0, 0:LOC_DIM] = f(params["bq1"])[0]
    b_loc[0, LOC_DIM:LOC_DIM + MAX_LOC] = f(params["be1"])[0]
    b_loc[1, 0:LOC_DIM] = f(params["bq2"])[0]
    b_loc[1, LOC_DIM:LW] = f(params["be2"])[0]
    b_loc[2, 0:LOC_DIM] = f(params["bq3"])[0]
    b_loc[2, LOC_DIM:LW] = f(params["be3"])[0]

    # fuse layers: input = [out(32) || loc_q(8) || loc_c(8)], output columns
    # 0:40 = question fuse, 40:80 = entity fuse (block structure keeps the
    # wrong-branch garbage confined to columns we never read).
    wqf, wef = f(params["w_qfuse"]), f(params["w_efuse"])
    w_fuse = np.zeros((ENC_OUT + LW, 2 * OUT_DIM), np.float32)        # (48,80)
    w_fuse[0:ENC_OUT, 0:OUT_DIM] = wqf[0:ENC_OUT, :]
    w_fuse[0:ENC_OUT, OUT_DIM:2 * OUT_DIM] = wef[0:ENC_OUT, :]
    w_fuse[ENC_OUT:ENC_OUT + LOC_DIM, 0:OUT_DIM] = wqf[ENC_OUT:OUT_DIM, :]
    w_fuse[ENC_OUT + LOC_DIM:ENC_OUT + LW, OUT_DIM:2 * OUT_DIM] = \
        wef[ENC_OUT:OUT_DIM, :]
    b_fuse_rows = np.zeros((ROWS, 2 * OUT_DIM), np.float32)
    b_fuse_rows[0:B, 0:OUT_DIM] = f(params["b_qfuse"])
    b_fuse_rows[B:B + N, OUT_DIM:2 * OUT_DIM] = f(params["b_efuse"])

    # one-hot expansion B -> B*sitr (row i takes question i // SITR)
    expand = np.zeros((N, B), np.float32)
    expand[np.arange(N), np.arange(N) // SITR] = 1.0

    blocks = [("w_out", w_out), ("b_out_rows", b_out_rows),
              ("w_loc1", w_loc1), ("w_loc2", w_loc2), ("w_loc3", w_loc3),
              ("b_loc", b_loc), ("w_fuse", w_fuse),
              ("b_fuse_rows", b_fuse_rows), ("expand", expand)]

    parts, index, r = [], {}, 0
    for name, a in blocks:                     # each block 8-row aligned
        rows, cols = a.shape
        prows = -(-rows // 8) * 8
        buf = np.zeros((prows, LANE), np.float32)
        buf[:rows, :cols] = a
        index[name] = (r, rows, cols)
        parts.append(buf)
        r += prows
    packed = jnp.asarray(np.concatenate(parts, axis=0))   # (208, 128) ~104 KB
    return packed, index


# ----------------------------- wrapper -----------------------------
def lamb_forward(hidden_q, hidden_c, question_latlongs, entity_latlongs,
                 w_packed, w_index):
    """hidden_q: (B, SEQ, Q_HID), hidden_c: (N, SEQ, E_HID),
       question_latlongs: (B, MAX_LOC, 2), entity_latlongs: (N, 2)."""
    pooled_q = hidden_q[:, 0, :].astype(jnp.float32)            # (B, 32)
    pooled_c = hidden_c[:, 0, :].astype(jnp.float32)            # (N, 32)
    qll = question_latlongs.astype(jnp.float32).reshape(B, -1)  # (B, 8)
    ell = entity_latlongs.astype(jnp.float32)                   # (N, 2)

    # single packed activation slab (rows = stacked question+entity examples)
    act = jnp.zeros((ROWS, LANE), jnp.float32)
    act = act.at[0:B, 0:Q_HID].set(pooled_q)
    act = act.at[B:B + N, Q_HID:Q_HID + E_HID].set(pooled_c)
    act = act.at[0:B, LOC_OFF:LOC_OFF + LOC_DIM].set(qll)
    act = act.at[B:B + N, LOC_OFF + LOC_DIM:LOC_OFF + LOC_DIM + 2].set(ell)

    kernel = functools.partial(_lamb_kernel, idx=w_index)
    vmem = pl.BlockSpec(memory_space=pltpu.MemorySpace.VMEM)
    flops = 2 * (ROWS * LOC_OFF * ENC_OUT                 # merged out-layer dot
                 + ROWS * (ENC_OUT + LW) * 2 * OUT_DIM    # merged fuse dot
                 + 3 * ROWS * LW * LW)                    # loc VPU FMAs
    bytes_accessed = 4 * (act.size + w_packed.size + N)

    # NOTE: no grid at this toy size (B=2, N=8); for production N add a grid
    # over entity rows with dimension_semantics=("parallel",) to use both TCs
    # on v7x.
    scores = pl.pallas_call(
        kernel,
        out_shape=jax.ShapeDtypeStruct((N, 1), jnp.float32),
        in_specs=[vmem, vmem],
        out_specs=vmem,
        cost_estimate=pl.CostEstimate(flops=flops, transcendentals=0,
                                      bytes_accessed=bytes_accessed),
    )(act, w_packed)
    return scores.reshape(B, SITR)


# ------------------------- pure-JAX reference -----------------------
def lamb_reference(hidden_q, hidden_c, question_latlongs, entity_latlongs, params):
    relu = lambda v: jnp.maximum(v, 0.0)
    pooled_q = hidden_q[:, 0, :]
    pooled_c = hidden_c[:, 0, :]
    out_q = relu(pooled_q) @ params["w_qout"] + params["b_qout"]
    x = question_latlongs.reshape(B, -1)
    x = relu(x @ params["wq1"] + params["bq1"])
    x = relu(x @ params["wq2"] + params["bq2"])
    loc_q = x @ params["wq3"] + params["bq3"]
    out_q = jnp.concatenate([out_q, loc_q], axis=-1)
    out_q = jnp.repeat(out_q, SITR, axis=0)                     # expand B -> N

    out_c = relu(pooled_c) @ params["w_eout"] + params["b_eout"]
    y = entity_latlongs
    y = relu(y @ params["we1"] + params["be1"])
    y = relu(y @ params["we2"] + params["be2"])
    loc_c = y @ params["we3"] + params["be3"]
    out_c = jnp.concatenate([out_c, loc_c], axis=-1)

    fq = out_q @ params["w_qfuse"] + params["b_qfuse"]
    fc = out_c @ params["w_efuse"] + params["b_efuse"]
    scores = jnp.sum(fq * fc, axis=-1)                          # bmm diagonal
    return scores.reshape(B, SITR)


# ------------------------------ main --------------------------------
if __name__ == "__main__":
    key = jax.random.PRNGKey(0)
    ks = jax.random.split(key, 24)

    def w(k, shape, scale=0.1):
        return (scale * jax.random.normal(k, shape)).astype(jnp.float32)

    params = {
        # question_out_layer / entity_out_layer  (in, out) layout, bias (1, out)
        "w_qout": w(ks[0], (Q_HID, ENC_OUT)), "b_qout": w(ks[1], (1, ENC_OUT), 0.01),
        "w_eout": w(ks[2], (E_HID, ENC_OUT)), "b_eout": w(ks[3], (1, ENC_OUT), 0.01),
        # q_loc_encoder: NumLocationEncoder(is_entity=False): 2L -> 2L -> 2L
        "wq1": w(ks[4], (LOC_DIM, LOC_DIM)), "bq1": w(ks[5], (1, LOC_DIM), 0.01),
        "wq2": w(ks[6], (LOC_DIM, LOC_DIM)), "bq2": w(ks[7], (1, LOC_DIM), 0.01),
        "wq3": w(ks[8], (LOC_DIM, LOC_DIM)), "bq3": w(ks[9], (1, LOC_DIM), 0.01),
        # e_loc_encoder: NumLocationEncoder(is_entity=True): 2 -> L -> 2L -> 2L
        "we1": w(ks[10], (2, MAX_LOC)),       "be1": w(ks[11], (1, MAX_LOC), 0.01),
        "we2": w(ks[12], (MAX_LOC, LOC_DIM)), "be2": w(ks[13], (1, LOC_DIM), 0.01),
        "we3": w(ks[14], (LOC_DIM, LOC_DIM)), "be3": w(ks[15], (1, LOC_DIM), 0.01),
        # fuse layers (out_dim -> out_dim)
        "w_qfuse": w(ks[16], (OUT_DIM, OUT_DIM)), "b_qfuse": w(ks[17], (1, OUT_DIM), 0.01),
        "w_efuse": w(ks[18], (OUT_DIM, OUT_DIM)), "b_efuse": w(ks[19], (1, OUT_DIM), 0.01),
    }

    # synthetic encoder hidden states ([CLS] pooled inside the wrapper)
    hidden_q = jax.random.normal(ks[20], (B, SEQ, Q_HID), dtype=jnp.float32)
    hidden_c = jax.random.normal(ks[21], (N, SEQ, E_HID), dtype=jnp.float32)
    question_latlongs = jax.random.normal(ks[22], (B, MAX_LOC, 2), dtype=jnp.float32)
    entity_latlongs = jax.random.normal(ks[23], (N, 2), dtype=jnp.float32)

    w_packed, w_index = pack_lamb_params(params)    # built once, one DMA

    scores = lamb_forward(hidden_q, hidden_c, question_latlongs,
                          entity_latlongs, w_packed, w_index)
    scores = jax.block_until_ready(scores)

    ref = lamb_reference(hidden_q, hidden_c, question_latlongs,
                         entity_latlongs, params)
    np.testing.assert_allclose(np.asarray(scores), np.asarray(ref),
                               rtol=2e-3, atol=2e-3)
    assert scores.shape == (B, SITR)

    print("KERNEL_OK")
</pallas_src>

<mosaic_0001>
module attributes {stable_mosaic.version = 11 : i64} {
  func.func @_lamb_kernel(%arg0: memref<16x128xf32, #tpu.memory_space<vmem>>, %arg1: memref<208x128xf32, #tpu.memory_space<vmem>>, %arg2: memref<8x1xf32, #tpu.memory_space<vmem>>) attributes {dimension_semantics = [], scalar_prefetch = 0 : i64, scratch_operands = 0 : i64, tpu.core_type = #tpu.core_type<tc>} {
    %c0 = arith.constant 0 : index
    %c0_0 = arith.constant 0 : index
    %0 = vector.load %arg0[%c0, %c0_0] : memref<16x128xf32, #tpu.memory_space<vmem>>, vector<16x128xf32>
    %1 = vector.extract_strided_slice %0 {offsets = [0, 0], sizes = [16, 64], strides = [1, 1]} : vector<16x128xf32> to vector<16x64xf32>
    %2 = vector.extract_strided_slice %0 {offsets = [0, 64], sizes = [16, 16], strides = [1, 1]} : vector<16x128xf32> to vector<16x16xf32>
    %cst = arith.constant 0.000000e+00 : f32
    %3 = vector.broadcast %cst : f32 to vector<16x64xf32>
    %4 = arith.maximumf %1, %3 : vector<16x64xf32>
    %c0_1 = arith.constant 0 : index
    %c0_2 = arith.constant 0 : index
    %5 = vector.load %arg1[%c0_1, %c0_2] : memref<208x128xf32, #tpu.memory_space<vmem>>, vector<64x32xf32>
    %cst_3 = arith.constant dense<0.000000e+00> : vector<16x32xf32>
    %6 = tpu.matmul %4, %5, %cst_3 {dimension_numbers = #tpu.dot_dimension_numbers<[1], [0], [0], [1], [0, 0, 1, 1], [], []>} : vector<16x64xf32>, vector<64x32xf32>, vector<16x32xf32> -> vector<16x32xf32>
    %c64 = arith.constant 64 : index
    %c0_4 = arith.constant 0 : index
    %7 = vector.load %arg1[%c64, %c0_4] : memref<208x128xf32, #tpu.memory_space<vmem>>, vector<16x32xf32>
    %8 = arith.addf %6, %7 : vector<16x32xf32>
    %c128 = arith.constant 128 : index
    %c0_5 = arith.constant 0 : index
    %9 = vector.load %arg1[%c128, %c0_5] : memref<208x128xf32, #tpu.memory_space<vmem>>, vector<3x16xf32>
    %c80 = arith.constant 80 : index
    %c0_6 = arith.constant 0 : index
    %10 = vector.load %arg1[%c80, %c0_6] : memref<208x128xf32, #tpu.memory_space<vmem>>, vector<16x16xf32>
    %11 = vector.extract_strided_slice %2 {offsets = [0, 0], sizes = [16, 1], strides = [1, 1]} : vector<16x16xf32> to vector<16x1xf32>
    %12 = vector.extract_strided_slice %10 {offsets = [0, 0], sizes = [1, 16], strides = [1, 1]} : vector<16x16xf32> to vector<1x16xf32>
    %13 = vector.broadcast %11 : vector<16x1xf32> to vector<16x16xf32>
    %14 = vector.broadcast %12 : vector<1x16xf32> to vector<16x16xf32>
    %15 = arith.mulf %13, %14 : vector<16x16xf32>
    %16 = vector.extract_strided_slice %2 {offsets = [0, 1], sizes = [16, 1], strides = [1, 1]} : vector<16x16xf32> to vector<16x1xf32>
    %17 = vector.extract_strided_slice %10 {offsets = [1, 0], sizes = [1, 16], strides = [1, 1]} : vector<16x16xf32> to vector<1x16xf32>
    %18 = vector.broadcast %16 : vector<16x1xf32> to vector<16x16xf32>
    %19 = vector.broadcast %17 : vector<1x16xf32> to vector<16x16xf32>
    %20 = arith.mulf %18, %19 : vector<16x16xf32>
    %21 = arith.addf %15, %20 : vector<16x16xf32>
    %22 = vector.extract_strided_slice %2 {offsets = [0, 2], sizes = [16, 1], strides = [1, 1]} : vector<16x16xf32> to vector<16x1xf32>
    %23 = vector.extract_strided_slice %10 {offsets = [2, 0], sizes = [1, 16], strides = [1, 1]} : vector<16x16xf32> to vector<1x16xf32>
    %24 = vector.broadcast %22 : vector<16x1xf32> to vector<16x16xf32>
    %25 = vector.broadcast %23 : vector<1x16xf32> to vector<16x16xf32>
    %26 = arith.mulf %24, %25 : vector<16x16xf32>
    %27 = arith.addf %21, %26 : vector<16x16xf32>
    %28 = vector.extract_strided_slice %2 {offsets = [0, 3], sizes = [16, 1], strides = [1, 1]} : vector<16x16xf32> to vector<16x1xf32>
    %29 = vector.extract_strided_slice %10 {offsets = [3, 0], sizes = [1, 16], strides = [1, 1]} : vector<16x16xf32> to vector<1x16xf32>
    %30 = vector.broadcast %28 : vector<16x1xf32> to vector<16x16xf32>
    %31 = vector.broadcast %29 : vector<1x16xf32> to vector<16x16xf32>
    %32 = arith.mulf %30, %31 : vector<16x16xf32>
    %33 = arith.addf %27, %32 : vector<16x16xf32>
    %34 = vector.extract_strided_slice %2 {offsets = [0, 4], sizes = [16, 1], strides = [1, 1]} : vector<16x16xf32> to vector<16x1xf32>
    %35 = vector.extract_strided_slice %10 {offsets = [4, 0], sizes = [1, 16], strides = [1, 1]} : vector<16x16xf32> to vector<1x16xf32>
    %36 = vector.broadcast %34 : vector<16x1xf32> to vector<16x16xf32>
    %37 = vector.broadcast %35 : vector<1x16xf32> to vector<16x16xf32>
    %38 = arith.mulf %36, %37 : vector<16x16xf32>
    %39 = arith.addf %33, %38 : vector<16x16xf32>
    %40 = vector.extract_strided_slice %2 {offsets = [0, 5], sizes = [16, 1], strides = [1, 1]} : vector<16x16xf32> to vector<16x1xf32>
    %41 = vector.extract_strided_slice %10 {offsets = [5, 0], sizes = [1, 16], strides = [1, 1]} : vector<16x16xf32> to vector<1x16xf32>
    %42 = vector.broadcast %40 : vector<16x1xf32> to vector<16x16xf32>
    %43 = vector.broadcast %41 : vector<1x16xf32> to vector<16x16xf32>
    %44 = arith.mulf %42, %43 : vector<16x16xf32>
    %45 = arith.addf %39, %44 : vector<16x16xf32>
    %46 = vector.extract_strided_slice %2 {offsets = [0, 6], sizes = [16, 1], strides = [1, 1]} : vector<16x16xf32> to vector<16x1xf32>
    %47 = vector.extract_strided_slice %10 {offsets = [6, 0], sizes = [1, 16], strides = [1, 1]} : vector<16x16xf32> to vector<1x16xf32>
    %48 = vector.broadcast %46 : vector<16x1xf32> to vector<16x16xf32>
    %49 = vector.broadcast %47 : vector<1x16xf32> to vector<16x16xf32>
    %50 = arith.mulf %48, %49 : vector<16x16xf32>
    %51 = arith.addf %45, %50 : vector<16x16xf32>
    %52 = vector.extract_strided_slice %2 {offsets = [0, 7], sizes = [16, 1], strides = [1, 1]} : vector<16x16xf32> to vector<16x1xf32>
    %53 = vector.extract_strided_slice %10 {offsets = [7, 0], sizes = [1, 16], strides = [1, 1]} : vector<16x16xf32> to vector<1x16xf32>
    %54 = vector.broadcast %52 : vector<16x1xf32> to vector<16x16xf32>
    %55 = vector.broadcast %53 : vector<1x16xf32> to vector<16x16xf32>
    %56 = arith.mulf %54, %55 : vector<16x16xf32>
    %57 = arith.addf %51, %56 : vector<16x16xf32>
    %58 = vector.extract_strided_slice %2 {offsets = [0, 8], sizes = [16, 1], strides = [1, 1]} : vector<16x16xf32> to vector<16x1xf32>
    %59 = vector.extract_strided_slice %10 {offsets = [8, 0], sizes = [1, 16], strides = [1, 1]} : vector<16x16xf32> to vector<1x16xf32>
    %60 = vector.broadcast %58 : vector<16x1xf32> to vector<16x16xf32>
    %61 = vector.broadcast %59 : vector<1x16xf32> to vector<16x16xf32>
    %62 = arith.mulf %60, %61 : vector<16x16xf32>
    %63 = arith.addf %57, %62 : vector<16x16xf32>
    %64 = vector.extract_strided_slice %2 {offsets = [0, 9], sizes = [16, 1], strides = [1, 1]} : vector<16x16xf32> to vector<16x1xf32>
    %65 = vector.extract_strided_slice %10 {offsets = [9, 0], sizes = [1, 16], strides = [1, 1]} : vector<16x16xf32> to vector<1x16xf32>
    %66 = vector.broadcast %64 : vector<16x1xf32> to vector<16x16xf32>
    %67 = vector.broadcast %65 : vector<1x16xf32> to vector<16x16xf32>
    %68 = arith.mulf %66, %67 : vector<16x16xf32>
    %69 = arith.addf %63, %68 : vector<16x16xf32>
    %70 = vector.extract_strided_slice %9 {offsets = [0, 0], sizes = [1, 16], strides = [1, 1]} : vector<3x16xf32> to vector<1x16xf32>
    %71 = vector.broadcast %70 : vector<1x16xf32> to vector<16x16xf32>
    %72 = arith.addf %69, %71 : vector<16x16xf32>
    %cst_7 = arith.constant 0.000000e+00 : f32
    %73 = vector.broadcast %cst_7 : f32 to vector<16x16xf32>
    %74 = arith.maximumf %72, %73 : vector<16x16xf32>
    %c96 = arith.constant 96 : index
    %c0_8 = arith.constant 0 : index
    %75 = vector.load %arg1[%c96, %c0_8] : memref<208x128xf32, #tpu.memory_space<vmem>>, vector<16x16xf32>
    %76 = vector.extract_strided_slice %74 {offsets = [0, 0], sizes = [16, 1], strides = [1, 1]} : vector<16x16xf32> to vector<16x1xf32>
    %77 = vector.extract_strided_slice %75 {offsets = [0, 0], sizes = [1, 16], strides = [1, 1]} : vector<16x16xf32> to vector<1x16xf32>
    %78 = vector.broadcast %76 : vector<16x1xf32> to vector<16x16xf32>
    %79 = vector.broadcast %77 : vector<1x16xf32> to vector<16x16xf32>
    %80 = arith.mulf %78, %79 : vector<16x16xf32>
    %81 = vector.extract_strided_slice %74 {offsets = [0, 1], sizes = [16, 1], strides = [1, 1]} : vector<16x16xf32> to vector<16x1xf32>
    %82 = vector.extract_strided_slice %75 {offsets = [1, 0], sizes = [1, 16], strides = [1, 1]} : vector<16x16xf32> to vector<1x16xf32>
    %83 = vector.broadcast %81 : vector<16x1xf32> to vector<16x16xf32>
    %84 = vector.broadcast %82 : vector<1x16xf32> to vector<16x16xf32>
    %85 = arith.mulf %83, %84 : vector<16x16xf32>
    %86 = arith.addf %80, %85 : vector<16x16xf32>
    %87 = vector.extract_strided_slice %74 {offsets = [0, 2], sizes = [16, 1], strides = [1, 1]} : vector<16x16xf32> to vector<16x1xf32>
    %88 = vector.extract_strided_slice %75 {offsets = [2, 0], sizes = [1, 16], strides = [1, 1]} : vector<16x16xf32> to vector<1x16xf32>
    %89 = vector.broadcast %87 : vector<16x1xf32> to vector<16x16xf32>
    %90 = vector.broadcast %88 : vector<1x16xf32> to vector<16x16xf32>
    %91 = arith.mulf %89, %90 : vector<16x16xf32>
    %92 = arith.addf %86, %91 : vector<16x16xf32>
    %93 = vector.extract_strided_slice %74 {offsets = [0, 3], sizes = [16, 1], strides = [1, 1]} : vector<16x16xf32> to vector<16x1xf32>
    %94 = vector.extract_strided_slice %75 {offsets = [3, 0], sizes = [1, 16], strides = [1, 1]} : vector<16x16xf32> to vector<1x16xf32>
    %95 = vector.broadcast %93 : vector<16x1xf32> to vector<16x16xf32>
    %96 = vector.broadcast %94 : vector<1x16xf32> to vector<16x16xf32>
    %97 = arith.mulf %95, %96 : vector<16x16xf32>
    %98 = arith.addf %92, %97 : vector<16x16xf32>
    %99 = vector.extract_strided_slice %74 {offsets = [0, 4], sizes = [16, 1], strides = [1, 1]} : vector<16x16xf32> to vector<16x1xf32>
    %100 = vector.extract_strided_slice %75 {offsets = [4, 0], sizes = [1, 16], strides = [1, 1]} : vector<16x16xf32> to vector<1x16xf32>
    %101 = vector.broadcast %99 : vector<16x1xf32> to vector<16x16xf32>
    %102 = vector.broadcast %100 : vector<1x16xf32> to vector<16x16xf32>
    %103 = arith.mulf %101, %102 : vector<16x16xf32>
    %104 = arith.addf %98, %103 : vector<16x16xf32>
    %105 = vector.extract_strided_slice %74 {offsets = [0, 5], sizes = [16, 1], strides = [1, 1]} : vector<16x16xf32> to vector<16x1xf32>
    %106 = vector.extract_strided_slice %75 {offsets = [5, 0], sizes = [1, 16], strides = [1, 1]} : vector<16x16xf32> to vector<1x16xf32>
    %107 = vector.broadcast %105 : vector<16x1xf32> to vector<16x16xf32>
    %108 = vector.broadcast %106 : vector<1x16xf32> to vector<16x16xf32>
    %109 = arith.mulf %107, %108 : vector<16x16xf32>
    %110 = arith.addf %104, %109 : vector<16x16xf32>
    %111 = vector.extract_strided_slice %74 {offsets = [0, 6], sizes = [16, 1], strides = [1, 1]} : vector<16x16xf32> to vector<16x1xf32>
    %112 = vector.extract_strided_slice %75 {offsets = [6, 0], sizes = [1, 16], strides = [1, 1]} : vector<16x16xf32> to vector<1x16xf32>
    %113 = vector.broadcast %111 : vector<16x1xf32> to vector<16x16xf32>
    %114 = vector.broadcast %112 : vector<1x16xf32> to vector<16x16xf32>
    %115 = arith.mulf %113, %114 : vector<16x16xf32>
    %116 = arith.addf %110, %115 : vector<16x16xf32>
    %117 = vector.extract_strided_slice %74 {offsets = [0, 7], sizes = [16, 1], strides = [1, 1]} : vector<16x16xf32> to vector<16x1xf32>
    %118 = vector.extract_strided_slice %75 {offsets = [7, 0], sizes = [1, 16], strides = [1, 1]} : vector<16x16xf32> to vector<1x16xf32>
    %119 = vector.broadcast %117 : vector<16x1xf32> to vector<16x16xf32>
    %120 = vector.broadcast %118 : vector<1x16xf32> to vector<16x16xf32>
    %121 = arith.mulf %119, %120 : vector<16x16xf32>
    %122 = arith.addf %116, %121 : vector<16x16xf32>
    %123 = vector.extract_strided_slice %74 {offsets = [0, 8], sizes = [16, 1], strides = [1, 1]} : vector<16x16xf32> to vector<16x1xf32>
    %124 = vector.extract_strided_slice %75 {offsets = [8, 0], sizes = [1, 16], strides = [1, 1]} : vector<16x16xf32> to vector<1x16xf32>
    %125 = vector.broadcast %123 : vector<16x1xf32> to vector<16x16xf32>
    %126 = vector.broadcast %124 : vector<1x16xf32> to vector<16x16xf32>
    %127 = arith.mulf %125, %126 : vector<16x16xf32>
    %128 = arith.addf %122, %127 : vector<16x16xf32>
    %129 = vector.extract_strided_slice %74 {offsets = [0, 9], sizes = [16, 1], strides = [1, 1]} : vector<16x16xf32> to vector<16x1xf32>
    %130 = vector.extract_strided_slice %75 {offsets = [9, 0], sizes = [1, 16], strides = [1, 1]} : vector<16x16xf32> to vector<1x16xf32>
    %131 = vector.broadcast %129 : vector<16x1xf32> to vector<16x16xf32>
    %132 = vector.broadcast %130 : vector<1x16xf32> to vector<16x16xf32>
    %133 = arith.mulf %131, %132 : vector<16x16xf32>
    %134 = arith.addf %128, %133 : vector<16x16xf32>
    %135 = vector.extract_strided_slice %74 {offsets = [0, 10], sizes = [16, 1], strides = [1, 1]} : vector<16x16xf32> to vector<16x1xf32>
    %136 = vector.extract_strided_slice %75 {offsets = [10, 0], sizes = [1, 16], strides = [1, 1]} : vector<16x16xf32> to vector<1x16xf32>
    %137 = vector.broadcast %135 : vector<16x1xf32> to vector<16x16xf32>
    %138 = vector.broadcast %136 : vector<1x16xf32> to vector<16x16xf32>
    %139 = arith.mulf %137, %138 : vector<16x16xf32>
    %140 = arith.addf %134, %139 : vector<16x16xf32>
    %141 = vector.extract_strided_slice %74 {offsets = [0, 11], sizes = [16, 1], strides = [1, 1]} : vector<16x16xf32> to vector<16x1xf32>
    %142 = vector.extract_strided_slice %75 {offsets = [11, 0], sizes = [1, 16], strides = [1, 1]} : vector<16x16xf32> to vector<1x16xf32>
    %143 = vector.broadcast %141 : vector<16x1xf32> to vector<16x16xf32>
    %144 = vector.broadcast %142 : vector<1x16xf32> to vector<16x16xf32>
    %145 = arith.mulf %143, %144 : vector<16x16xf32>
    %146 = arith.addf %140, %145 : vector<16x16xf32>
    %147 = vector.extract_strided_slice %9 {offsets = [1, 0], sizes = [1, 16], strides = [1, 1]} : vector<3x16xf32> to vector<1x16xf32>
    %148 = vector.broadcast %147 : vector<1x16xf32> to vector<16x16xf32>
    %149 = arith.addf %146, %148 : vector<16x16xf32>
    %cst_9 = arith.constant 0.000000e+00 : f32
    %150 = vector.broadcast %cst_9 : f32 to vector<16x16xf32>
    %151 = arith.maximumf %149, %150 : vector<16x16xf32>
    %c112 = arith.constant 112 : index
    %c0_10 = arith.constant 0 : index
    %152 = vector.load %arg1[%c112, %c0_10] : memref<208x128xf32, #tpu.memory_space<vmem>>, vector<16x16xf32>
    %153 = vector.extract_strided_slice %151 {offsets = [0, 0], sizes = [16, 1], strides = [1, 1]} : vector<16x16xf32> to vector<16x1xf32>
    %154 = vector.extract_strided_slice %152 {offsets = [0, 0], sizes = [1, 16], strides = [1, 1]} : vector<16x16xf32> to vector<1x16xf32>
    %155 = vector.broadcast %153 : vector<16x1xf32> to vector<16x16xf32>
    %156 = vector.broadcast %154 : vector<1x16xf32> to vector<16x16xf32>
    %157 = arith.mulf %155, %156 : vector<16x16xf32>
    %158 = vector.extract_strided_slice %151 {offsets = [0, 1], sizes = [16, 1], strides = [1, 1]} : vector<16x16xf32> to vector<16x1xf32>
    %159 = vector.extract_strided_slice %152 {offsets = [1, 0], sizes = [1, 16], strides = [1, 1]} : vector<16x16xf32> to vector<1x16xf32>
    %160 = vector.broadcast %158 : vector<16x1xf32> to vector<16x16xf32>
    %161 = vector.broadcast %159 : vector<1x16xf32> to vector<16x16xf32>
    %162 = arith.mulf %160, %161 : vector<16x16xf32>
    %163 = arith.addf %157, %162 : vector<16x16xf32>
    %164 = vector.extract_strided_slice %151 {offsets = [0, 2], sizes = [16, 1], strides = [1, 1]} : vector<16x16xf32> to vector<16x1xf32>
    %165 = vector.extract_strided_slice %152 {offsets = [2, 0], sizes = [1, 16], strides = [1, 1]} : vector<16x16xf32> to vector<1x16xf32>
    %166 = vector.broadcast %164 : vector<16x1xf32> to vector<16x16xf32>
    %167 = vector.broadcast %165 : vector<1x16xf32> to vector<16x16xf32>
    %168 = arith.mulf %166, %167 : vector<16x16xf32>
    %169 = arith.addf %163, %168 : vector<16x16xf32>
    %170 = vector.extract_strided_slice %151 {offsets = [0, 3], sizes = [16, 1], strides = [1, 1]} : vector<16x16xf32> to vector<16x1xf32>
    %171 = vector.extract_strided_slice %152 {offsets = [3, 0], sizes = [1, 16], strides = [1, 1]} : vector<16x16xf32> to vector<1x16xf32>
    %172 = vector.broadcast %170 : vector<16x1xf32> to vector<16x16xf32>
    %173 = vector.broadcast %171 : vector<1x16xf32> to vector<16x16xf32>
    %174 = arith.mulf %172, %173 : vector<16x16xf32>
    %175 = arith.addf %169, %174 : vector<16x16xf32>
    %176 = vector.extract_strided_slice %151 {offsets = [0, 4], sizes = [16, 1], strides = [1, 1]} : vector<16x16xf32> to vector<16x1xf32>
    %177 = vector.extract_strided_slice %152 {offsets = [4, 0], sizes = [1, 16], strides = [1, 1]} : vector<16x16xf32> to vector<1x16xf32>
    %178 = vector.broadcast %176 : vector<16x1xf32> to vector<16x16xf32>
    %179 = vector.broadcast %177 : vector<1x16xf32> to vector<16x16xf32>
    %180 = arith.mulf %178, %179 : vector<16x16xf32>
    %181 = arith.addf %175, %180 : vector<16x16xf32>
    %182 = vector.extract_strided_slice %151 {offsets = [0, 5], sizes = [16, 1], strides = [1, 1]} : vector<16x16xf32> to vector<16x1xf32>
    %183 = vector.extract_strided_slice %152 {offsets = [5, 0], sizes = [1, 16], strides = [1, 1]} : vector<16x16xf32> to vector<1x16xf32>
    %184 = vector.broadcast %182 : vector<16x1xf32> to vector<16x16xf32>
    %185 = vector.broadcast %183 : vector<1x16xf32> to vector<16x16xf32>
    %186 = arith.mulf %184, %185 : vector<16x16xf32>
    %187 = arith.addf %181, %186 : vector<16x16xf32>
    %188 = vector.extract_strided_slice %151 {offsets = [0, 6], sizes = [16, 1], strides = [1, 1]} : vector<16x16xf32> to vector<16x1xf32>
    %189 = vector.extract_strided_slice %152 {offsets = [6, 0], sizes = [1, 16], strides = [1, 1]} : vector<16x16xf32> to vector<1x16xf32>
    %190 = vector.broadcast %188 : vector<16x1xf32> to vector<16x16xf32>
    %191 = vector.broadcast %189 : vector<1x16xf32> to vector<16x16xf32>
    %192 = arith.mulf %190, %191 : vector<16x16xf32>
    %193 = arith.addf %187, %192 : vector<16x16xf32>
    %194 = vector.extract_strided_slice %151 {offsets = [0, 7], sizes = [16, 1], strides = [1, 1]} : vector<16x16xf32> to vector<16x1xf32>
    %195 = vector.extract_strided_slice %152 {offsets = [7, 0], sizes = [1, 16], strides = [1, 1]} : vector<16x16xf32> to vector<1x16xf32>
    %196 = vector.broadcast %194 : vector<16x1xf32> to vector<16x16xf32>
    %197 = vector.broadcast %195 : vector<1x16xf32> to vector<16x16xf32>
    %198 = arith.mulf %196, %197 : vector<16x16xf32>
    %199 = arith.addf %193, %198 : vector<16x16xf32>
    %200 = vector.extract_strided_slice %151 {offsets = [0, 8], sizes = [16, 1], strides = [1, 1]} : vector<16x16xf32> to vector<16x1xf32>
    %201 = vector.extract_strided_slice %152 {offsets = [8, 0], sizes = [1, 16], strides = [1, 1]} : vector<16x16xf32> to vector<1x16xf32>
    %202 = vector.broadcast %200 : vector<16x1xf32> to vector<16x16xf32>
    %203 = vector.broadcast %201 : vector<1x16xf32> to vector<16x16xf32>
    %204 = arith.mulf %202, %203 : vector<16x16xf32>
    %205 = arith.addf %199, %204 : vector<16x16xf32>
    %206 = vector.extract_strided_slice %151 {offsets = [0, 9], sizes = [16, 1], strides = [1, 1]} : vector<16x16xf32> to vector<16x1xf32>
    %207 = vector.extract_strided_slice %152 {offsets = [9, 0], sizes = [1, 16], strides = [1, 1]} : vector<16x16xf32> to vector<1x16xf32>
    %208 = vector.broadcast %206 : vector<16x1xf32> to vector<16x16xf32>
    %209 = vector.broadcast %207 : vector<1x16xf32> to vector<16x16xf32>
    %210 = arith.mulf %208, %209 : vector<16x16xf32>
    %211 = arith.addf %205, %210 : vector<16x16xf32>
    %212 = vector.extract_strided_slice %151 {offsets = [0, 10], sizes = [16, 1], strides = [1, 1]} : vector<16x16xf32> to vector<16x1xf32>
    %213 = vector.extract_strided_slice %152 {offsets = [10, 0], sizes = [1, 16], strides = [1, 1]} : vector<16x16xf32> to vector<1x16xf32>
    %214 = vector.broadcast %212 : vector<16x1xf32> to vector<16x16xf32>
    %215 = vector.broadcast %213 : vector<1x16xf32> to vector<16x16xf32>
    %216 = arith.mulf %214, %215 : vector<16x16xf32>
    %217 = arith.addf %211, %216 : vector<16x16xf32>
    %218 = vector.extract_strided_slice %151 {offsets = [0, 11], sizes = [16, 1], strides = [1, 1]} : vector<16x16xf32> to vector<16x1xf32>
    %219 = vector.extract_strided_slice %152 {offsets = [11, 0], sizes = [1, 16], strides = [1, 1]} : vector<16x16xf32> to vector<1x16xf32>
    %220 = vector.broadcast %218 : vector<16x1xf32> to vector<16x16xf32>
    %221 = vector.broadcast %219 : vector<1x16xf32> to vector<16x16xf32>
    %222 = arith.mulf %220, %221 : vector<16x16xf32>
    %223 = arith.addf %217, %222 : vector<16x16xf32>
    %224 = vector.extract_strided_slice %151 {offsets = [0, 12], sizes = [16, 1], strides = [1, 1]} : vector<16x16xf32> to vector<16x1xf32>
    %225 = vector.extract_strided_slice %152 {offsets = [12, 0], sizes = [1, 16], strides = [1, 1]} : vector<16x16xf32> to vector<1x16xf32>
    %226 = vector.broadcast %224 : vector<16x1xf32> to vector<16x16xf32>
    %227 = vector.broadcast %225 : vector<1x16xf32> to vector<16x16xf32>
    %228 = arith.mulf %226, %227 : vector<16x16xf32>
    %229 = arith.addf %223, %228 : vector<16x16xf32>
    %230 = vector.extract_strided_slice %151 {offsets = [0, 13], sizes = [16, 1], strides = [1, 1]} : vector<16x16xf32> to vector<16x1xf32>
    %231 = vector.extract_strided_slice %152 {offsets = [13, 0], sizes = [1, 16], strides = [1, 1]} : vector<16x16xf32> to vector<1x16xf32>
    %232 = vector.broadcast %230 : vector<16x1xf32> to vector<16x16xf32>
    %233 = vector.broadcast %231 : vector<1x16xf32> to vector<16x16xf32>
    %234 = arith.mulf %232, %233 : vector<16x16xf32>
    %235 = arith.addf %229, %234 : vector<16x16xf32>
    %236 = vector.extract_strided_slice %151 {offsets = [0, 14], sizes = [16, 1], strides = [1, 1]} : vector<16x16xf32> to vector<16x1xf32>
    %237 = vector.extract_strided_slice %152 {offsets = [14, 0], sizes = [1, 16], strides = [1, 1]} : vector<16x16xf32> to vector<1x16xf32>
    %238 = vector.broadcast %236 : vector<16x1xf32> to vector<16x16xf32>
    %239 = vector.broadcast %237 : vector<1x16xf32> to vector<16x16xf32>
    %240 = arith.mulf %238, %239 : vector<16x16xf32>
    %241 = arith.addf %235, %240 : vector<16x16xf32>
    %242 = vector.extract_strided_slice %151 {offsets = [0, 15], sizes = [16, 1], strides = [1, 1]} : vector<16x16xf32> to vector<16x1xf32>
    %243 = vector.extract_strided_slice %152 {offsets = [15, 0], sizes = [1, 16], strides = [1, 1]} : vector<16x16xf32> to vector<1x16xf32>
    %244 = vector.broadcast %242 : vector<16x1xf32> to vector<16x16xf32>
    %245 = vector.broadcast %243 : vector<1x16xf32> to vector<16x16xf32>
    %246 = arith.mulf %244, %245 : vector<16x16xf32>
    %247 = arith.addf %241, %246 : vector<16x16xf32>
    %248 = vector.extract_strided_slice %9 {offsets = [2, 0], sizes = [1, 16], strides = [1, 1]} : vector<3x16xf32> to vector<1x16xf32>
    %249 = vector.broadcast %248 : vector<1x16xf32> to vector<16x16xf32>
    %250 = arith.addf %247, %249 : vector<16x16xf32>
    %251 = tpu.concatenate %8, %250 in 1 : vector<16x32xf32>, vector<16x16xf32> -> vector<16x48xf32>
    %c136 = arith.constant 136 : index
    %c0_11 = arith.constant 0 : index
    %252 = vector.load %arg1[%c136, %c0_11] : memref<208x128xf32, #tpu.memory_space<vmem>>, vector<48x80xf32>
    %cst_12 = arith.constant dense<0.000000e+00> : vector<16x80xf32>
    %253 = tpu.matmul %251, %252, %cst_12 {dimension_numbers = #tpu.dot_dimension_numbers<[1], [0], [0], [1], [0, 0, 1, 1], [], []>} : vector<16x48xf32>, vector<48x80xf32>, vector<16x80xf32> -> vector<16x80xf32>
    %c184 = arith.constant 184 : index
    %c0_13 = arith.constant 0 : index
    %254 = vector.load %arg1[%c184, %c0_13] : memref<208x128xf32, #tpu.memory_space<vmem>>, vector<16x80xf32>
    %255 = arith.addf %253, %254 : vector<16x80xf32>
    %256 = vector.extract_strided_slice %255 {offsets = [0, 0], sizes = [2, 40], strides = [1, 1]} : vector<16x80xf32> to vector<2x40xf32>
    %257 = vector.extract_strided_slice %255 {offsets = [2, 40], sizes = [8, 40], strides = [1, 1]} : vector<16x80xf32> to vector<8x40xf32>
    %c200 = arith.constant 200 : index
    %c0_14 = arith.constant 0 : index
    %258 = vector.load %arg1[%c200, %c0_14] : memref<208x128xf32, #tpu.memory_space<vmem>>, vector<8x2xf32>
    %259 = vector.extract_strided_slice %258 {offsets = [0, 0], sizes = [8, 1], strides = [1, 1]} : vector<8x2xf32> to vector<8x1xf32>
    %260 = vector.extract_strided_slice %256 {offsets = [0, 0], sizes = [1, 40], strides = [1, 1]} : vector<2x40xf32> to vector<1x40xf32>
    %261 = vector.broadcast %259 : vector<8x1xf32> to vector<8x40xf32>
    %262 = vector.broadcast %260 : vector<1x40xf32> to vector<8x40xf32>
    %263 = arith.mulf %261, %262 : vector<8x40xf32>
    %264 = vector.extract_strided_slice %258 {offsets = [0, 1], sizes = [8, 1], strides = [1, 1]} : vector<8x2xf32> to vector<8x1xf32>
    %265 = vector.extract_strided_slice %256 {offsets = [1, 0], sizes = [1, 40], strides = [1, 1]} : vector<2x40xf32> to vector<1x40xf32>
    %266 = vector.broadcast %264 : vector<8x1xf32> to vector<8x40xf32>
    %267 = vector.broadcast %265 : vector<1x40xf32> to vector<8x40xf32>
    %268 = arith.mulf %266, %267 : vector<8x40xf32>
    %269 = arith.addf %263, %268 : vector<8x40xf32>
    %270 = arith.mulf %269, %257 : vector<8x40xf32>
    %cst_15 = arith.constant dense<0.000000e+00> : vector<8xf32>
    %271 = vector.multi_reduction <add>, %270, %cst_15 [1] : vector<8x40xf32> to vector<8xf32>
    %272 = vector.shape_cast %271 : vector<8xf32> to vector<8x1xf32>
    %c0_16 = arith.constant 0 : index
    %c0_17 = arith.constant 0 : index
    %273 = vector.load %arg2[%c0_16, %c0_17] : memref<8x1xf32, #tpu.memory_space<vmem>>, vector<8x1xf32>
    tpu.vector_store %arg2[%c0_16, %c0_17], %272 {strides = array<i32>} : memref<8x1xf32, #tpu.memory_space<vmem>>, vector<8x1xf32>,
    return
  }
}

</mosaic_0001>

<bundles_post_ra>
// kernel: tpu_custom_call.1
= control target key start
LH: loop header
LB: loop body
LE: loop exit
PB: predicated region body
PF: predicated region fallthrough
CT: control target
= control target key end

     0   :  { %7 = vsyncpa [#allocation3], 0  ;;  %s1061_s0 = inlined_call_operand.hbm [shape: f32[16,128], index: 0, kind: input, shape index: {}]   ;;  %s1062_s1 = inlined_call_operand.hbm [shape: f32[208,128], index: 1, kind: input, shape index: {}]   ;;  %s1063_s2 = inlined_call_operand.vmem [shape: f32[8,1], index: 2, kind: output, shape index: {}]  }
   0x1   :  { %s13_s11 = sshll.u32 %s1061_s0, 4  ;;  %s14_s11 = int_to_ptr.hbm [resolvable:$true] %s13_s11 }
   0x2   :  { %8 = vsyncpa [#allocation5], 0  ;;  %s857_s12 = smov [#allocation2]   ;;  %s26_s16 = sshll.u32 %s1062_s1, 4  ;;  %s27_s16 = int_to_ptr.hbm [resolvable:$true] %s26_s16 }
   0x3   :  { %s15_s13 = sshll.u32 %s857_s12, 4  ;;  %s858_s17 = smov 128   ;;  %s16_s13 = int_to_ptr.vmem [resolvable:$true] %s15_s13 }
   0x4   :  { %s859_s18 = smov 8   ;;  %s860_s19 = smov [#allocation4]  }
   0x5   :  { %21 = dma.hbm_to_vmem [thread:$0]  %s14_s11, 256, %s16_s13, [#allocation3], %s858_s17, %s858_s17, %s859_s18  }
   0x6   :  { %s28_s20 = sshll.u32 %s860_s19, 4  ;;  %s29_s20 = int_to_ptr.vmem [resolvable:$true] %s28_s20 }
   0x7   :  { %34 = dma.hbm_to_vmem [thread:$0]  %s27_s16, 3328, %s29_s20, [#allocation5], %s858_s17, %s858_s17, %s859_s18  }
   0x8   :  { %853 = dma.done.wait [#allocation3], 256  }
   0x9   :  { %854 = vsyncadd [#allocation3], 4294967040 }
   0xa   :  { %855 = dma.done.wait [#allocation5], 3328  }
   0xb   :  { %856 = vsyncadd [#allocation5], 4294963968  ;;  %v861_v0 = vmov 65   ;;  %v862_v1 = vmov 64   ;;  %v863_v2 = vmov 66   ;;  %v910_v3 = vld [vmem:[#allocation2] sm:$0xff] }
   0xc   :  { %738 = vset.pattern.permute.xlu1 %v861_v0  ;;  %737 = vset.pattern.permute.xlu0 %v862_v1  ;;  %v915_v4 = vld [vmem:[#allocation2 + $0x8] sm:$0xff]  ;;  %v864_v5 = vmov 68   ;;  %v865_v6 = vmov 67   ;;  %v866_v7 = vmov 69   ;;  %v867_v8 = vmov 70   ;;  %v934_v18 = vld [vmem:[#allocation4 + $0x50] sm:$0xff] }
   0xd   :  { %739 = vset.pattern.permute.xlu2 %v863_v2  ;;  %104 = vperm.xlu1 %738, %v910_v3   ;;  %v868_v9 = vmov 71   ;;  %v869_v10 = vmov 73   ;;  %v870_v11 = vmov 72   ;;  %v111_v20 = vperm.slane %v934_v18, 1  ;;  %v89_v50 = vld [vmem:[#allocation4 + $0x58] sm:$0xff]  ;;  %s887_s0 = smov 32  }
   0xe   :  { %92 = vperm.xlu0 %737, %v910_v3   ;;  %117 = vperm.xlu2 %739, %v910_v3   ;;  %v100_v22 = vperm.slane %v934_v18, 0  ;;  %v871_v25 = vmov 0   ;;  %v872_v26 = vmov 2   ;;  %v137_v27 = vperm.slane %v934_v18, 3  ;;  %v947_v0 = vld [vmem:[#allocation4 + $0x80] sm:$0x7] }
   0xf   :  { %v873_v28 = vmov 1   ;;  %v124_v30 = vperm.slane %v934_v18, 2  ;;  %v150_v36 = vperm.slane %v934_v18, 4  ;;  %v163_v38 = vperm.slane %v934_v18, 5  ;;  %s888_s1 = smov 88  }
  0x10   :  { %v176_v41 = vperm.slane %v934_v18, 6  ;;  %v189_v48 = vperm.slane %v934_v18, 7  ;;  %v202_v57 = vperm.slane %v89_v50, 0  ;;  %v215_v58 = vperm.slane %v89_v50, 1 }
  0x11   :  { %vm57_vm0 = vcmask 523264   ;;  %vm609_vm1 = vcmask 261120   ;;  %vm620_vm2 = vcmask 392192   ;;  %vm667_vm3 = vcmask 1045504  }
  0x12   :  { %vm675_vm4 = vcmask 326656   ;;  %vm679_vm5 = vcmask 7168  }
  0x15   :  { %108 = vperm.xlu1 %738, %v915_v4  }
  0x16   :  { %97 = vperm.xlu0 %737, %v915_v4   ;;  %121 = vperm.xlu2 %739, %v915_v4  }
  0x1d   :  { %741 = vset.pattern.permute.xlu1 %v864_v5 }
  0x1e   :  { %740 = vset.pattern.permute.xlu0 %v865_v6  ;;  %147 = vperm.xlu1 %741, %v915_v4  }
  0x1f   :  { %134 = vperm.xlu0 %740, %v915_v4   ;;  %742 = vset.pattern.permute.xlu2 %v866_v7 }
  0x20   :  { %160 = vperm.xlu2 %742, %v915_v4  }
  0x26   :  { %743 = vset.pattern.permute.xlu1 %v865_v6 }
  0x27   :  { %745 = vset.pattern.permute.xlu0 %v864_v5  ;;  %130 = vperm.xlu1 %743, %v910_v3  }
  0x28   :  { %143 = vperm.xlu0 %745, %v910_v3   ;;  %744 = vset.pattern.permute.xlu2 %v867_v8 }
  0x29   :  { %173 = vperm.xlu2 %744, %v915_v4  }
  0x2f   :  { %746 = vset.pattern.permute.xlu1 %v868_v9 }
  0x30   :  { %750 = vset.pattern.permute.xlu0 %v869_v10  ;;  %186 = vperm.xlu1 %746, %v915_v4  }
  0x31   :  { %212 = vperm.xlu0 %750, %v915_v4   ;;  %747 = vset.pattern.permute.xlu2 %v866_v7 }
  0x32   :  { %156 = vperm.xlu2 %747, %v910_v3  }
  0x38   :  { %748 = vset.pattern.permute.xlu1 %v870_v11 }
  0x39   :  { %199 = vperm.xlu1 %748, %v915_v4   ;;  %755 = vset.pattern.permute.xlu0 %v873_v28 }
  0x3a   :  { %749 = vset.pattern.permute.xlu2 %v867_v8  ;;  %v220_v8 = vperm.slane %v947_v0, 0 }
  0x3b   :  { %169 = vperm.xlu2 %749, %v910_v3  }
  0x41   :  { %751 = vset.pattern.permute.xlu1 %v868_v9 }
  0x42   :  { %182 = vperm.xlu1 %751, %v910_v3  }
  0x43   :  { %752 = vset.pattern.permute.xlu2 %v870_v11 }
  0x44   :  { %195 = vperm.xlu2 %752, %v910_v3  }
  0x4a   :  { %753 = vset.pattern.permute.xlu1 %v869_v10 }
  0x4b   :  { %208 = vperm.xlu1 %753, %v910_v3  }
  0x4c   :  { %754 = vset.pattern.permute.xlu2 %v871_v25 }
  0x53   :  { %756 = vset.pattern.permute.xlu1 %v872_v26 }
  0x68   :  { %v118_v12 = vpop.permute.xlu2 %117 }
  0x69   :  { %v125_v51 = vmul.f32 %v124_v30, %v118_v12 }
  0x70   :  { %v122_v15 = vpop.permute.xlu2 %121 }
  0x71   :  { %v126_v33 = vmul.f32 %v124_v30, %v122_v15  ;;  %v875_v30 = vmov 3  }
  0x7a   :  { %v161_v21 = vpop.permute.xlu2 %160 }
  0x7b   :  { %v165_v45 = vmul.f32 %v163_v38, %v161_v21 }
  0x7f   :  { %v105_v13 = vpop.permute.xlu1 %104 }
  0x80   :  { %v93_v14 = vpop.permute.xlu0 %92  ;;  %v112_v43 = vmul.f32 %v111_v20, %v105_v13 }
  0x81   :  { %v101_v44 = vmul.f32 %v100_v22, %v93_v14 }
  0x83   :  { %v174_v35 = vpop.permute.xlu2 %173  ;;  %v114_v52 = vadd.f32 %v112_v43, %v101_v44 }
  0x84   :  { %v178_v53 = vmul.f32 %v176_v41, %v174_v35  ;;  %v877_v35 = vmov 5  }
  0x85   :  { %v127_v60 = vadd.f32 %v125_v51, %v114_v52 }
  0x87   :  { %v109_v16 = vpop.permute.xlu1 %108 }
  0x88   :  { %v98_v17 = vpop.permute.xlu0 %97  ;;  %v113_v23 = vmul.f32 %v111_v20, %v109_v16 }
  0x89   :  { %v102_v24 = vmul.f32 %v100_v22, %v98_v17 }
  0x8b   :  { %v115_v31 = vadd.f32 %v113_v23, %v102_v24 }
  0x8c   :  { %v157_v49 = vpop.permute.xlu2 %156 }
  0x8d   :  { %v128_v37 = vadd.f32 %v126_v33, %v115_v31  ;;  %v164_v10 = vmul.f32 %v163_v38, %v157_v49  ;;  %v880_v38 = vmov 10   ;;  %v225_v49 = vld [vmem:[#allocation4 + $0x60] sm:$0xff] }
  0x8e   :  { %v237_v51 = vperm.slane %v225_v49, 0  ;;  %v248_v52 = vperm.slane %v225_v49, 1 }
  0x90   :  { %v148_v19 = vpop.permute.xlu1 %147 }
  0x91   :  { %v135_v29 = vpop.permute.xlu0 %134  ;;  %v152_v40 = vmul.f32 %v150_v36, %v148_v19 }
  0x92   :  { %v139_v34 = vmul.f32 %v137_v27, %v135_v29  ;;  %v874_v29 = vmov 4  }
  0x94   :  { %v141_v39 = vadd.f32 %v139_v34, %v128_v37  ;;  %v876_v34 = vmov 8   ;;  %v879_v37 = vmov 7  }
  0x95   :  { %v170_v9 = vpop.permute.xlu2 %169 }
  0x96   :  { %v154_v46 = vadd.f32 %v152_v40, %v141_v39  ;;  %v177_v15 = vmul.f32 %v176_v41, %v170_v9  ;;  %v881_v39 = vmov 9   ;;  %v882_v40 = vmov 11  }
  0x98   :  { %v167_v54 = vadd.f32 %v165_v45, %v154_v46 }
  0x99   :  { %v131_v32 = vpop.permute.xlu1 %130 }
  0x9a   :  { %v144_v42 = vpop.permute.xlu0 %143  ;;  %v138_v55 = vmul.f32 %v137_v27, %v131_v32  ;;  %v180_v61 = vadd.f32 %v178_v53, %v167_v54 }
  0x9b   :  { %v151_v62 = vmul.f32 %v150_v36, %v144_v42  ;;  %v878_v36 = vmov 6  }
  0x9c   :  { %v140_v1 = vadd.f32 %v138_v55, %v127_v60  ;;  %v274_v60 = vperm.slane %v225_v49, 3 }
  0x9e   :  { %v153_v11 = vadd.f32 %v151_v62, %v140_v1  ;;  %v196_v19 = vpop.permute.xlu2 %195  ;;  %v287_v62 = vperm.slane %v225_v49, 4 }
  0x9f   :  { %v203_v22 = vmul.f32 %v202_v57, %v196_v19 }
  0xa0   :  { %v166_v14 = vadd.f32 %v164_v10, %v153_v11 }
  0xa2   :  { %v187_v47 = vpop.permute.xlu1 %186  ;;  %v179_v20 = vadd.f32 %v177_v15, %v166_v14 }
  0xa3   :  { %v191_v56 = vmul.f32 %v189_v48, %v187_v47  ;;  %v213_v59 = vpop.permute.xlu0 %212 }
  0xa4   :  { %v217_v6 = vmul.f32 %v215_v58, %v213_v59 }
  0xa5   :  { %v193_v2 = vadd.f32 %v191_v56, %v180_v61 }
  0xab   :  { %v200_v63 = vpop.permute.xlu1 %199 }
  0xac   :  { %v204_v5 = vmul.f32 %v202_v57, %v200_v63  ;;  %v261_v57 = vperm.slane %v225_v49, 2 }
  0xae   :  { %v206_v7 = vadd.f32 %v204_v5, %v193_v2 }
  0xb0   :  { %v219_v12 = vadd.f32 %v217_v6, %v206_v7  ;;  %v300_v7 = vperm.slane %v225_v49, 5 }
  0xb2   :  { %v222_v13 = vadd.f32 %v220_v8, %v219_v12  ;;  %v313_v12 = vperm.slane %v225_v49, 6 }
  0xb4   :  { %v224_v16 = vmax.f32 %v222_v13, 0.0  ;;  %v183_v17 = vpop.permute.xlu1 %182 }
  0xb5   :  { %v190_v18 = vmul.f32 %v189_v48, %v183_v17 }
  0xb6   :  { %258 = vperm.xlu1 %756, %v224_v16   ;;  %245 = vperm.xlu0 %755, %v224_v16  }
  0xb7   :  { %234 = vperm.xlu2 %754, %v224_v16   ;;  %v192_v21 = vadd.f32 %v190_v18, %v179_v20  ;;  %v326_v18 = vperm.slane %v225_v49, 7 }
  0xb9   :  { %v205_v24 = vadd.f32 %v203_v22, %v192_v21 }
  0xbd   :  { %v209_v23 = vpop.permute.xlu1 %208 }
  0xbe   :  { %v216_v27 = vmul.f32 %v215_v58, %v209_v23  ;;  %760 = vset.pattern.permute.xlu0 %v874_v29  ;;  %758 = vset.pattern.permute.xlu1 %v871_v25  ;;  %v226_v23 = vld [vmem:[#allocation4 + $0x68] sm:$0xff] }
  0xbf   :  { %757 = vset.pattern.permute.xlu2 %v875_v30  ;;  %284 = vperm.xlu0 %760, %v224_v16  }
  0xc0   :  { %v218_v31 = vadd.f32 %v216_v27, %v205_v24  ;;  %271 = vperm.xlu2 %757, %v224_v16  }
  0xc2   :  { %v221_v32 = vadd.f32 %v220_v8, %v218_v31 }
  0xc4   :  { %v223_v33 = vmax.f32 %v221_v32, 0.0 }
  0xc6   :  { %229 = vperm.xlu1 %758, %v223_v33  }
  0xc7   :  { %280 = vperm.xlu0 %760, %v223_v33  }
  0xc8   :  { %759 = vset.pattern.permute.xlu2 %v873_v28 }
  0xc9   :  { %241 = vperm.xlu2 %759, %v223_v33  }
  0xce   :  { %761 = vset.pattern.permute.xlu1 %v872_v26 }
  0xcf   :  { %254 = vperm.xlu1 %761, %v223_v33   ;;  %767 = vset.pattern.permute.xlu0 %v876_v34 }
  0xd0   :  { %336 = vperm.xlu0 %767, %v224_v16  }
  0xd1   :  { %762 = vset.pattern.permute.xlu2 %v877_v35 }
  0xd2   :  { %297 = vperm.xlu2 %762, %v224_v16  }
  0xd7   :  { %763 = vset.pattern.permute.xlu1 %v875_v30 }
  0xd8   :  { %267 = vperm.xlu1 %763, %v223_v33   ;;  %332 = vperm.xlu0 %767, %v223_v33  }
  0xda   :  { %764 = vset.pattern.permute.xlu2 %v878_v36 }
  0xdb   :  { %310 = vperm.xlu2 %764, %v224_v16  }
  0xe0   :  { %765 = vset.pattern.permute.xlu1 %v879_v37  ;;  %774 = vset.pattern.permute.xlu0 %v880_v38 }
  0xe1   :  { %323 = vperm.xlu1 %765, %v224_v16   ;;  %358 = vperm.xlu0 %774, %v223_v33  }
  0xe3   :  { %766 = vset.pattern.permute.xlu2 %v877_v35 }
  0xe4   :  { %293 = vperm.xlu2 %766, %v223_v33  }
  0xe9   :  { %768 = vset.pattern.permute.xlu1 %v878_v36  ;;  %778 = vset.pattern.permute.xlu0 %v875_v30 }
  0xea   :  { %306 = vperm.xlu1 %768, %v223_v33  }
  0xec   :  { %769 = vset.pattern.permute.xlu2 %v881_v39 }
  0xed   :  { %349 = vperm.xlu2 %769, %v224_v16  }
  0xf2   :  { %770 = vset.pattern.permute.xlu1 %v879_v37 }
  0xf3   :  { %319 = vperm.xlu1 %770, %v223_v33  }
  0xf5   :  { %771 = vset.pattern.permute.xlu2 %v880_v38 }
  0xf6   :  { %362 = vperm.xlu2 %771, %v224_v16  }
  0xfb   :  { %772 = vset.pattern.permute.xlu1 %v882_v40 }
  0xfc   :  { %375 = vperm.xlu1 %772, %v224_v16  }
  0xfe   :  { %773 = vset.pattern.permute.xlu2 %v881_v39 }
  0xff   :  { %345 = vperm.xlu2 %773, %v223_v33  }
 0x104   :  { %371 = vperm.xlu1 %772, %v223_v33  }
 0x107   :  { %775 = vset.pattern.permute.xlu2 %v871_v25 }
 0x10c   :  { %776 = vset.pattern.permute.xlu1 %v873_v28 }
 0x111   :  { %v235_v41 = vpop.permute.xlu2 %234 }
 0x112   :  { %v239_v56 = vmul.f32 %v237_v51, %v235_v41  ;;  %v339_v41 = vperm.slane %v226_v23, 0 }
 0x11a   :  { %v272_v42 = vpop.permute.xlu2 %271 }
 0x11b   :  { %v276_v5 = vmul.f32 %v274_v60, %v272_v42 }
 0x123   :  { %v242_v44 = vpop.permute.xlu2 %241 }
 0x124   :  { %v249_v10 = vmul.f32 %v248_v52, %v242_v44 }
 0x128   :  { %v259_v43 = vpop.permute.xlu1 %258  ;;  %v246_v47 = vpop.permute.xlu0 %245 }
 0x129   :  { %v250_v55 = vmul.f32 %v248_v52, %v246_v47  ;;  %v263_v61 = vmul.f32 %v261_v57, %v259_v43 }
 0x12b   :  { %v252_v58 = vadd.f32 %v250_v55, %v239_v56  ;;  %v365_v55 = vperm.slane %v226_v23, 2 }
 0x12c   :  { %v298_v46 = vpop.permute.xlu2 %297 }
 0x12d   :  { %v265_v63 = vadd.f32 %v263_v61, %v252_v58  ;;  %v302_v15 = vmul.f32 %v300_v7, %v298_v46  ;;  %v352_v46 = vperm.slane %v226_v23, 1  ;;  %v378_v58 = vperm.slane %v226_v23, 3 }
 0x12f   :  { %v278_v8 = vadd.f32 %v276_v5, %v265_v63 }
 0x131   :  { %v285_v53 = vpop.permute.xlu0 %284 }
 0x132   :  { %v289_v6 = vmul.f32 %v287_v62, %v285_v53 }
 0x134   :  { %v291_v11 = vadd.f32 %v289_v6, %v278_v8 }
 0x135   :  { %v311_v50 = vpop.permute.xlu2 %310 }
 0x136   :  { %v304_v20 = vadd.f32 %v302_v15, %v291_v11  ;;  %v315_v21 = vmul.f32 %v313_v12, %v311_v50 }
 0x138   :  { %v230_v45 = vpop.permute.xlu1 %229  ;;  %v317_v32 = vadd.f32 %v315_v21, %v304_v20  ;;  %v54_v21 = vld [vmem:[#allocation4 + $0x38] sm:$0xff] }
 0x139   :  { %v281_v2 = vpop.permute.xlu0 %280  ;;  %v238_v9 = vmul.f32 %v237_v51, %v230_v45  ;;  %691 = vmatpush.msra.mxu2 %v54_v21  ;;  %72 = vmatpush.msra.mxu0 %v54_v21 }
 0x13a   :  { %v288_v33 = vmul.f32 %v287_v62, %v281_v2 }
 0x13b   :  { %v251_v16 = vadd.f32 %v249_v10, %v238_v9 }
 0x13e   :  { %v294_v59 = vpop.permute.xlu2 %293 }
 0x13f   :  { %v301_v45 = vmul.f32 %v300_v7, %v294_v59  ;;  %v383_v59 = vperm.slane %v947_v0, 1 }
 0x141   :  { %v255_v48 = vpop.permute.xlu1 %254 }
 0x142   :  { %v262_v13 = vmul.f32 %v261_v57, %v255_v48  ;;  %v337_v24 = vpop.permute.xlu0 %336 }
 0x143   :  { %v341_v47 = vmul.f32 %v339_v41, %v337_v24 }
 0x144   :  { %v264_v22 = vadd.f32 %v262_v13, %v251_v16 }
 0x147   :  { %v350_v14 = vpop.permute.xlu2 %349 }
 0x14a   :  { %v268_v54 = vpop.permute.xlu1 %267  ;;  %v333_v50 = vpop.permute.xlu0 %332 }
 0x14b   :  { %v275_v17 = vmul.f32 %v274_v60, %v268_v54  ;;  %v354_v54 = vmul.f32 %v352_v46, %v350_v14  ;;  %v340_v61 = vmul.f32 %v339_v41, %v333_v50  ;;  %v1019_v41 = vld [vmem:[#allocation4 + $0x70] sm:$0xff] }
 0x14d   :  { %v277_v27 = vadd.f32 %v275_v17, %v264_v22  ;;  %v53_v22 = vld [vmem:[#allocation4 + $0x30] sm:$0xff] }
 0x14e   :  { %692 = vmatpush.msra.mxu2 %v53_v22  ;;  %73 = vmatpush.msra.mxu0 %v53_v22 }
 0x14f   :  { %v290_v42 = vadd.f32 %v288_v33, %v277_v27  ;;  %v52_v27 = vld [vmem:[#allocation4 + $0x28] sm:$0xff] }
 0x150   :  { %v363_v44 = vpop.permute.xlu2 %362  ;;  %693 = vmatpush.msra.mxu2 %v52_v27  ;;  %74 = vmatpush.msra.mxu0 %v52_v27 }
 0x151   :  { %v303_v52 = vadd.f32 %v301_v45, %v290_v42  ;;  %v367_v62 = vmul.f32 %v365_v55, %v363_v44  ;;  %v48_v42 = vld [vmem:[#allocation4 + $0x8] sm:$0xff]  ;;  %v400_v44 = vperm.slane %v1019_v41, 0  ;;  %v411_v45 = vperm.slane %v1019_v41, 1 }
 0x153   :  { %v324_v1 = vpop.permute.xlu1 %323  ;;  %v359_v9 = vpop.permute.xlu0 %358 }
 0x154   :  { %v328_v31 = vmul.f32 %v326_v18, %v324_v1 }
 0x156   :  { %v330_v43 = vadd.f32 %v328_v31, %v317_v32  ;;  %v51_v31 = vld [vmem:[#allocation4 + $0x20] sm:$0xff]  ;;  %v49_v32 = vld [vmem:[#allocation4 + $0x10] sm:$0xff] }
 0x157   :  { %694 = vmatpush.msra.mxu2 %v51_v31  ;;  %75 = vmatpush.msra.mxu0 %v51_v31 }
 0x158   :  { %v343_v49 = vadd.f32 %v341_v47, %v330_v43 }
 0x159   :  { %v346_v63 = vpop.permute.xlu2 %345 }
 0x15a   :  { %v356_v60 = vadd.f32 %v354_v54, %v343_v49  ;;  %v353_v7 = vmul.f32 %v352_v46, %v346_v63  ;;  %v47_v46 = vld [vmem:[#allocation4] sm:$0xff] }
 0x15c   :  { %v307_v19 = vpop.permute.xlu1 %306  ;;  %v369_v5 = vadd.f32 %v367_v62, %v356_v60  ;;  %v463_v62 = vperm.slane %v1019_v41, 5 }
 0x15d   :  { %v314_v48 = vmul.f32 %v313_v12, %v307_v19  ;;  %v366_v12 = vmul.f32 %v365_v55, %v359_v9  ;;  %v437_v55 = vperm.slane %v1019_v41, 3 }
 0x15f   :  { %v316_v56 = vadd.f32 %v314_v48, %v303_v52  ;;  %v46_v48 = vmax.f32 %v915_v4, 0.0  ;;  %v424_v52 = vperm.slane %v1019_v41, 2 }
 0x165   :  { %v320_v51 = vpop.permute.xlu1 %319 }
 0x166   :  { %v327_v53 = vmul.f32 %v326_v18, %v320_v51 }
 0x168   :  { %v329_v57 = vadd.f32 %v327_v53, %v316_v56  ;;  %v450_v56 = vperm.slane %v1019_v41, 4 }
 0x16a   :  { %v342_v2 = vadd.f32 %v340_v61, %v329_v57 }
 0x16c   :  { %v355_v11 = vadd.f32 %v353_v7, %v342_v2 }
 0x16e   :  { %v376_v1 = vpop.permute.xlu1 %375  ;;  %v368_v15 = vadd.f32 %v366_v12, %v355_v11  ;;  %v489_v11 = vperm.slane %v1019_v41, 7 }
 0x16f   :  { %v380_v6 = vmul.f32 %v378_v58, %v376_v1 }
 0x171   :  { %v382_v8 = vadd.f32 %v380_v6, %v369_v5  ;;  %v476_v6 = vperm.slane %v1019_v41, 6 }
 0x173   :  { %v385_v10 = vadd.f32 %v383_v59, %v382_v8  ;;  %v1032_v8 = vld [vmem:[#allocation4 + $0x78] sm:$0xff] }
 0x174   :  { %v502_v12 = vperm.slane %v1032_v8, 0  ;;  %v567_v41 = vperm.slane %v1032_v8, 5 }
 0x175   :  { %v972_v13 = vmax.f32 %v385_v10, 0.0 }
 0x176   :  { %v372_v14 = vpop.permute.xlu1 %371 }
 0x177   :  { %v379_v16 = vmul.f32 %v378_v58, %v372_v14  ;;  %434 = vperm.xlu0 %778, %v972_v13   ;;  %408 = vperm.xlu1 %776, %v972_v13  }
 0x178   :  { %397 = vperm.xlu2 %775, %v972_v13  }
 0x179   :  { %v381_v17 = vadd.f32 %v379_v16, %v368_v15 }
 0x17b   :  { %v384_v18 = vadd.f32 %v383_v59, %v381_v17 }
 0x17d   :  { %v386_v19 = vmax.f32 %v384_v18, 0.0 }
 0x17f   :  { %783 = vset.pattern.permute.xlu0 %v877_v35  ;;  %779 = vset.pattern.permute.xlu1 %v871_v25  ;;  %v883_v35 = vmov 13  }
 0x180   :  { %777 = vset.pattern.permute.xlu2 %v872_v26  ;;  %460 = vperm.xlu0 %783, %v972_v13  }
 0x181   :  { %421 = vperm.xlu2 %777, %v972_v13   ;;  %392 = vperm.xlu1 %779, %v386_v19  }
 0x188   :  { %456 = vperm.xlu0 %783, %v386_v19  }
 0x189   :  { %780 = vset.pattern.permute.xlu2 %v873_v28  ;;  %781 = vset.pattern.permute.xlu1 %v874_v29 }
 0x18a   :  { %404 = vperm.xlu2 %780, %v386_v19   ;;  %447 = vperm.xlu1 %781, %v972_v13  }
 0x190   :  { %790 = vset.pattern.permute.xlu0 %v881_v39 }
 0x191   :  { %512 = vperm.xlu0 %790, %v972_v13  }
 0x192   :  { %782 = vset.pattern.permute.xlu2 %v872_v26  ;;  %784 = vset.pattern.permute.xlu1 %v875_v30  ;;  %v884_v26 = vmov 12   ;;  %v886_v30 = vmov 15  }
 0x193   :  { %417 = vperm.xlu2 %782, %v386_v19   ;;  %430 = vperm.xlu1 %784, %v386_v19  }
 0x199   :  { %508 = vperm.xlu0 %790, %v386_v19  }
 0x19b   :  { %785 = vset.pattern.permute.xlu2 %v878_v36  ;;  %786 = vset.pattern.permute.xlu1 %v874_v29 }
 0x19c   :  { %473 = vperm.xlu2 %785, %v972_v13   ;;  %443 = vperm.xlu1 %786, %v386_v19  }
 0x1a1   :  { %797 = vset.pattern.permute.xlu0 %v883_v35 }
 0x1a2   :  { %564 = vperm.xlu0 %797, %v972_v13  }
 0x1a4   :  { %787 = vset.pattern.permute.xlu2 %v879_v37  ;;  %788 = vset.pattern.permute.xlu1 %v876_v34 }
 0x1a5   :  { %486 = vperm.xlu2 %787, %v972_v13   ;;  %499 = vperm.xlu1 %788, %v972_v13  }
 0x1aa   :  { %560 = vperm.xlu0 %797, %v386_v19  }
 0x1ad   :  { %789 = vset.pattern.permute.xlu2 %v878_v36  ;;  %791 = vset.pattern.permute.xlu1 %v879_v37 }
 0x1ae   :  { %469 = vperm.xlu2 %789, %v386_v19   ;;  %482 = vperm.xlu1 %791, %v386_v19  }
 0x1b2   :  { %804 = vset.pattern.permute.xlu0 %v873_v28  ;;  %v885_v28 = vmov 14  }
 0x1b6   :  { %792 = vset.pattern.permute.xlu2 %v880_v38  ;;  %793 = vset.pattern.permute.xlu1 %v876_v34 }
 0x1b7   :  { %525 = vperm.xlu2 %792, %v972_v13   ;;  %495 = vperm.xlu1 %793, %v386_v19  }
 0x1bf   :  { %794 = vset.pattern.permute.xlu2 %v882_v40  ;;  %795 = vset.pattern.permute.xlu1 %v884_v26 }
 0x1c0   :  { %538 = vperm.xlu2 %794, %v972_v13   ;;  %551 = vperm.xlu1 %795, %v972_v13  }
 0x1c8   :  { %796 = vset.pattern.permute.xlu2 %v880_v38  ;;  %798 = vset.pattern.permute.xlu1 %v882_v40 }
 0x1c9   :  { %521 = vperm.xlu2 %796, %v386_v19   ;;  %534 = vperm.xlu1 %798, %v386_v19  }
 0x1d1   :  { %799 = vset.pattern.permute.xlu2 %v885_v28  ;;  %800 = vset.pattern.permute.xlu1 %v884_v26 }
 0x1d2   :  { %577 = vperm.xlu2 %799, %v972_v13   ;;  %547 = vperm.xlu1 %800, %v386_v19   ;;  %v398_v29 = vpop.permute.xlu2 %397 }
 0x1d3   :  { %v402_v49 = vmul.f32 %v400_v44, %v398_v29 }
 0x1da   :  { %801 = vset.pattern.permute.xlu2 %v886_v30  ;;  %802 = vset.pattern.permute.xlu1 %v885_v28  ;;  %v45_v28 = vmax.f32 %v910_v3, 0.0  ;;  %v541_v3 = vperm.slane %v1032_v8, 3 }
 0x1db   :  { %590 = vperm.xlu2 %801, %v972_v13   ;;  %573 = vperm.xlu1 %802, %v386_v19   ;;  %v422_v34 = vpop.permute.xlu2 %421 }
 0x1dc   :  { %v426_v54 = vmul.f32 %v424_v52, %v422_v34 }
 0x1e3   :  { %586 = vperm.xlu2 %801, %v386_v19   ;;  %v515_v19 = vperm.slane %v1032_v8, 1 }
 0x1e4   :  { %v1010_v36 = vpop.permute.xlu2 %404 }
 0x1e5   :  { %v412_v29 = vmul.f32 %v411_v45, %v1010_v36 }
 0x1e9   :  { %v409_v37 = vpop.permute.xlu1 %408  ;;  %v435_v24 = vpop.permute.xlu0 %434 }
 0x1ea   :  { %v413_v51 = vmul.f32 %v411_v45, %v409_v37  ;;  %v439_v4 = vmul.f32 %v437_v55, %v435_v24  ;;  %v528_v37 = vperm.slane %v1032_v8, 2 }
 0x1eb   :  { %803 = vset.pattern.permute.xlu2 %v871_v25  ;;  %v50_v25 = vld [vmem:[#allocation4 + $0x18] sm:$0xff] }
 0x1ec   :  { %695 = vmatpush.msra.mxu2 %v50_v25  ;;  %76 = vmatpush.msra.mxu0 %v50_v25  ;;  %v415_v50 = vadd.f32 %v413_v51, %v402_v49  ;;  %v554_v25 = vperm.slane %v1032_v8, 4 }
 0x1ed   :  { %v1013_v38 = vpop.permute.xlu2 %417 }
 0x1ee   :  { %696 = vmatpush.msra.mxu2 %v49_v32  ;;  %77 = vmatpush.msra.mxu0 %v49_v32  ;;  %v428_v58 = vadd.f32 %v426_v54, %v415_v50  ;;  %v425_v22 = vmul.f32 %v424_v52, %v1013_v38  ;;  %v580_v38 = vperm.slane %v1032_v8, 6  ;;  %v593_v52 = vperm.slane %v1032_v8, 7  ;;  %v617_v54 = vld [vmem:[#allocation4 + $0xb0] sm:$0xff] }
 0x1ef   :  { %699 = vmatpush.msra.mxu3 %v617_v54  ;;  %637 = vmatpush.msra.mxu1 %v617_v54 }
 0x1f0   :  { %697 = vmatpush.msra.mxu2 %v48_v42  ;;  %78 = vmatpush.msra.mxu0 %v48_v42  ;;  %v441_v63 = vadd.f32 %v439_v4, %v428_v58 }
 0x1f2   :  { %v461_v47 = vpop.permute.xlu0 %460  ;;  %698 = vmatpush.msra.mxu2 %v47_v46  ;;  %79 = vmatpush.msra.mxu0 %v47_v46 }
 0x1f3   :  { %v1015_v39 = vpop.permute.xlu1 %392  ;;  %688 = vmatmul.msk.f32.vlgmr.msra.gmra.mxu2 %vm57_vm0, %v46_v48  ;;  %v465_v5 = vmul.f32 %v463_v62, %v461_v47  ;;  %687 = vmatmul.msk.f32.vlgmr.msra.gmra.mxu0 %vm57_vm0, %v45_v28 }
 0x1f4   :  { %v401_v35 = vmul.f32 %v400_v44, %v1015_v39 }
 0x1f6   :  { %v474_v40 = vpop.permute.xlu2 %473 }
 0x1f7   :  { %v478_v10 = vmul.f32 %v476_v6, %v474_v40 }
 0x1fa   :  { %v457_v60 = vpop.permute.xlu0 %456 }
 0x1fb   :  { %v464_v48 = vmul.f32 %v463_v62, %v457_v60  ;;  %v598_v60 = vperm.slane %v947_v0, 2 }
 0x1fc   :  { %v448_v20 = vpop.permute.xlu1 %447 }
 0x1fd   :  { %v452_v61 = vmul.f32 %v450_v56, %v448_v20  ;;  %v414_v20 = vadd.f32 %v412_v29, %v401_v35 }
 0x1ff   :  { %v487_v23 = vpop.permute.xlu2 %486  ;;  %v454_v2 = vadd.f32 %v452_v61, %v441_v63  ;;  %v427_v36 = vadd.f32 %v425_v22, %v414_v20  ;;  %v615_v61 = vld [vmem:[#allocation4 + $0xa0] sm:$0xff] }
 0x200   :  { %v491_v15 = vmul.f32 %v489_v11, %v487_v23 }
 0x201   :  { %v467_v7 = vadd.f32 %v465_v5, %v454_v2 }
 0x203   :  { %v513_v9 = vpop.permute.xlu0 %512  ;;  %v480_v14 = vadd.f32 %v478_v10, %v467_v7 }
 0x204   :  { %v517_v34 = vmul.f32 %v515_v19, %v513_v9 }
 0x205   :  { %v1017_v33 = vpop.permute.xlu1 %430  ;;  %v493_v18 = vadd.f32 %v491_v15, %v480_v14 }
 0x206   :  { %v438_v39 = vmul.f32 %v437_v55, %v1017_v33  ;;  %v616_v55 = vld [vmem:[#allocation4 + $0xa8] sm:$0xff] }
 0x207   :  { %700 = vmatpush.msra.mxu3 %v616_v55  ;;  %638 = vmatpush.msra.mxu1 %v616_v55 }
 0x208   :  { %v1021_v43 = vpop.permute.xlu2 %469  ;;  %v440_v32 = vadd.f32 %v438_v39, %v427_v36  ;;  %v55_v36 = vld [vmem:[#allocation4 + $0x40] sm:$0xff] }
 0x209   :  { %v477_v58 = vmul.f32 %v476_v6, %v1021_v43  ;;  %701 = vmatpush.msra.mxu3 %v615_v61  ;;  %639 = vmatpush.msra.mxu1 %v615_v61 }
 0x20b   :  { %v509_v30 = vpop.permute.xlu0 %508 }
 0x20c   :  { %v516_v6 = vmul.f32 %v515_v19, %v509_v30  ;;  %v613_v19 = vld [vmem:[#allocation4 + $0x90] sm:$0xff]  ;;  %v650_v30 = vld [vmem:[#allocation4 + $0xc8] sm:$0xff] }
 0x20d   :  { %653 = vperm.xlu2 %803, %v650_v30  }
 0x20e   :  { %v444_v53 = vpop.permute.xlu1 %443 }
 0x20f   :  { %v451_v27 = vmul.f32 %v450_v56, %v444_v53 }
 0x211   :  { %v526_v57 = vpop.permute.xlu2 %525  ;;  %v453_v44 = vadd.f32 %v451_v27, %v440_v32 }
 0x212   :  { %v530_v24 = vmul.f32 %v528_v37, %v526_v57 }
 0x213   :  { %v466_v53 = vadd.f32 %v464_v48, %v453_v44  ;;  %v618_v44 = vld [vmem:[#allocation4 + $0xb8] sm:$0xff] }
 0x214   :  { %v565_v45 = vpop.permute.xlu0 %564 }
 0x215   :  { %v569_v51 = vmul.f32 %v567_v41, %v565_v45  ;;  %v479_v62 = vadd.f32 %v477_v58, %v466_v53 }
 0x217   :  { %v500_v1 = vpop.permute.xlu1 %499 }
 0x218   :  { %v504_v16 = vmul.f32 %v502_v12, %v500_v1 }
 0x21a   :  { %v539_v59 = vpop.permute.xlu2 %538  ;;  %v506_v26 = vadd.f32 %v504_v16, %v493_v18 }
 0x21b   :  { %v543_v42 = vmul.f32 %v541_v3, %v539_v59  ;;  %v614_v59 = vld [vmem:[#allocation4 + $0x98] sm:$0xff] }
 0x21c   :  { %v519_v21 = vadd.f32 %v517_v34, %v506_v26  ;;  %702 = vmatpush.msra.mxu3 %v614_v59  ;;  %640 = vmatpush.msra.mxu1 %v614_v59  ;;  %v561_v18 = vpop.permute.xlu0 %560 }
 0x21d   :  { %v568_v26 = vmul.f32 %v567_v41, %v561_v18  ;;  %v619_v41 = vld [vmem:[#allocation4 + $0xc0] sm:$0xff] }
 0x21e   :  { %v532_v31 = vadd.f32 %v530_v24, %v519_v21  ;;  %703 = vmatpush.msra.mxu3 %v613_v19  ;;  %641 = vmatpush.msra.mxu1 %v613_v19 }
 0x220   :  { %v483_v13 = vpop.permute.xlu1 %482  ;;  %v545_v46 = vadd.f32 %v543_v42, %v532_v31 }
 0x221   :  { %v490_v4 = vmul.f32 %v489_v11, %v483_v13 }
 0x223   :  { %v1036_v17 = vpop.permute.xlu2 %521  ;;  %v492_v9 = vadd.f32 %v490_v4, %v479_v62 }
 0x224   :  { %v529_v11 = vmul.f32 %v528_v37, %v1036_v17  ;;  %v612_v17 = vld [vmem:[#allocation4 + $0x88] sm:$0xff] }
 0x225   :  { %704 = vmatpush.msra.mxu3 %v612_v17  ;;  %642 = vmatpush.msra.mxu1 %v612_v17  ;;  %v56_v37 = vld [vmem:[#allocation4 + $0x48] sm:$0xff] }
 0x229   :  { %v496_v40 = vpop.permute.xlu1 %495 }
 0x22a   :  { %v503_v2 = vmul.f32 %v502_v12, %v496_v40 }
 0x22c   :  { %v578_v23 = vpop.permute.xlu2 %577  ;;  %v505_v43 = vadd.f32 %v503_v2, %v492_v9 }
 0x22d   :  { %v582_v56 = vmul.f32 %v580_v38, %v578_v23 }
 0x22e   :  { %v518_v0 = vadd.f32 %v516_v6, %v505_v43 }
 0x230   :  { %v531_v14 = vadd.f32 %v529_v11, %v518_v0 }
 0x232   :  { %v552_v47 = vpop.permute.xlu1 %551 }
 0x233   :  { %v556_v33 = vmul.f32 %v554_v25, %v552_v47 }
 0x235   :  { %v558_v49 = vadd.f32 %v556_v33, %v545_v46  ;;  %v591_v50 = vpop.permute.xlu2 %590 }
 0x236   :  { %v595_v1 = vmul.f32 %v593_v52, %v591_v50 }
 0x237   :  { %v571_v57 = vadd.f32 %v569_v51, %v558_v49 }
 0x239   :  { %v584_v63 = vadd.f32 %v582_v56, %v571_v57 }
 0x23b   :  { %v597_v5 = vadd.f32 %v595_v1, %v584_v63  ;;  %v535_v7 = vpop.permute.xlu1 %534 }
 0x23c   :  { %v542_v13 = vmul.f32 %v541_v3, %v535_v7 }
 0x23d   :  { %v600_v10 = vadd.f32 %v598_v60, %v597_v5  ;;  %v587_v28 = vpop.permute.xlu2 %586 }
 0x23e   :  { %v544_v16 = vadd.f32 %v542_v13, %v531_v14  ;;  %v594_v20 = vmul.f32 %v593_v52, %v587_v28 }
 0x23f   :  { %605 = vrot.lane.b32.xlu0 %v600_v10, %s887_s0 }
 0x244   :  { %v548_v12 = vpop.permute.xlu1 %547 }
 0x245   :  { %v555_v15 = vmul.f32 %v554_v25, %v548_v12 }
 0x247   :  { %v557_v35 = vadd.f32 %v555_v15, %v544_v16  ;;  %659 = vperm.xlu0 %804, %v650_v30  }
 0x249   :  { %v570_v34 = vadd.f32 %v568_v26, %v557_v35 }
 0x24d   :  { %v574_v29 = vpop.permute.xlu1 %573 }
 0x24e   :  { %v581_v40 = vmul.f32 %v580_v38, %v574_v29 }
 0x250   :  { %v583_v21 = vadd.f32 %v581_v40, %v570_v34 }
 0x252   :  { %v596_v22 = vadd.f32 %v594_v20, %v583_v21 }
 0x254   :  { %v599_v8 = vadd.f32 %v598_v60, %v596_v22 }
 0x256   :  { %603 = vrot.lane.b32.xlu1 %v599_v8, %s887_s0 }
 0x267   :  { %v654_v53 = vpop.permute.xlu2 %653 }
 0x270   :  { %v81_v27 = vpop.f32.mrf.mxu0 }
 0x271   :  { %v82_v31 = vadd.f32 %v81_v27, %v55_v36 }
 0x276   :  { %v84_v39 = vpop.f32.mrf.mxu2 }
 0x277   :  { %v85_v23 = vadd.f32 %v84_v39, %v56_v37 }
 0x2b1   :  { %v606_v24 = vpop.permute.xlu0 %605 }
 0x2b2   :  { %v611_v3 = vsel %vm609_vm1, %v85_v23, %v606_v24 }
 0x2b3   :  { %690 = vmatmul.msk.f32.vlgmr.msra.gmra.mxu3 %vm620_vm2, %v611_v3 }
 0x2b9   :  { %v660_v52 = vpop.permute.xlu0 %659 }
 0x2c8   :  { %v604_v25 = vpop.permute.xlu1 %603 }
 0x2c9   :  { %v610_v32 = vsel %vm609_vm1, %v82_v31, %v604_v25 }
 0x2ca   :  { %689 = vmatmul.msk.f32.vlgmr.msra.gmra.mxu1 %vm620_vm2, %v610_v32 }
 0x336   :  { %v647_v42 = vpop.f32.mrf.mxu3 }
 0x337   :  { %v648_v45 = vadd.f32 %v647_v42, %v619_v41 }
 0x339   :  { %v669_v38 = vrot.slane %v648_v45, 2 }
 0x347   :  { %v644_v47 = vpop.f32.mrf.mxu1 }
 0x348   :  { %v645_v46 = vadd.f32 %v644_v47, %v618_v44 }
 0x34a   :  { %v668_v33 = vrot.slane %v645_v46, 2  ;;  %v662_v51 = vperm.slane %v645_v46, 1  ;;  %v656_v49 = vperm.slane %v645_v46, 0 }
 0x34c   :  { %v670_v48 = vsel %vm667_vm3, %v668_v33, %v669_v38  ;;  %v663_v50 = vmul.f32 %v662_v51, %v660_v52  ;;  %v657_v54 = vmul.f32 %v656_v49, %v654_v53 }
 0x34d   :  { %671 = vrot.lane.b32.xlu1 %v670_v48, %s888_s1 }
 0x34e   :  { %v664_v55 = vadd.f32 %v663_v50, %v657_v54 }
 0x3bf   :  { %v672_v56 = vpop.permute.xlu1 %671 }
 0x3c0   :  { %v674_v57 = vmul.f32 %v672_v56, %v664_v55 }
 0x3c2   :  { %v676_v58 = vsel %vm675_vm4, %v674_v57, 0.0 }
 0x3c3   :  { %677 = vadd.xlane.f32.xlu2 %v676_v58 }
 0x436   :  { %v678_v4 = vpop.xlane.xlu2 %677 }
 0x437   :  { %680 = vst.msk [vmem:[%s1063_s2] sm:$0xff] %vm679_vm5, %v678_v4 }
 0x438   :  { %685 = vsyncpa [#allocation3], 1 }
 0x439   :  { %686 = vsyncpa [#allocation5], 1 }

</bundles_post_ra>
